<compile_context>
chip_gen: v7x
topology: tpu7x:2x2x1
jax: 0.10.0
libtpu: 0.0.40
codegen_flags: <defaults>
</compile_context>

<pallas_src>
import jax
import jax.numpy as jnp
from jax.experimental import pallas as pl
from jax.experimental.pallas import tpu as pltpu

C_HID = 16   # conv channels (fixed by the module)
KSIZE = 3    # conv kernel size (fixed by the module)
L_IN = 10    # Linear(6,1) requires input length 10


def _round_up(n, m):
    return ((n + m - 1) // m) * m


# ---------------------------------------------------------------------------
# Kernel: one batch tile per grid step.
#   x_ref : (L_IN, BT)   inputs, batch on the lane axis
#   w_ref : (16, L_IN)   folded affine weight
#   b_ref : (16, 1)      folded affine bias
#   o_ref : (2, BT)      row 0 = mean over channels, row 1 = unbiased std
# ---------------------------------------------------------------------------
def conv_model_kernel(x_ref, w_ref, b_ref, o_ref):
    y = jnp.dot(w_ref[...], x_ref[...],
                preferred_element_type=jnp.float32) + b_ref[...]       # (16, BT)
    mu = jnp.sum(y, axis=0, keepdims=True) * (1.0 / C_HID)              # (1, BT)
    d = y - mu
    var = jnp.sum(d * d, axis=0, keepdims=True) * (1.0 / (C_HID - 1))   # (1, BT)
    o_ref[...] = jnp.concatenate([mu, jnp.sqrt(var)], axis=0)           # (2, BT)


# ---------------------------------------------------------------------------
# Pure-JAX single-example forward (conv -> conv -> linear), used both to
# fold the affine map and as the correctness reference.
# ---------------------------------------------------------------------------
def _single_forward(xvec, w1, b1, w2, b2, wl, bl):
    """xvec: (L,) -> y: (16,) channel values before mean/std."""
    L = xvec.shape[0]
    L1, L2 = L - 2, L - 4
    w1f = w1[:, 0, :]                                                   # (16, 3)
    # Conv1d(1, 16, 3)
    x_win = jnp.stack([xvec[t:t + KSIZE] for t in range(L1)], axis=0)   # (L1, 3)
    h1 = x_win @ w1f.T + b1                                             # (L1, 16)
    # Conv1d(16, 16, 3)
    h1_win = jnp.stack([h1[t:t + KSIZE] for t in range(L2)], axis=0)    # (L2, 3, 16)
    h2 = jnp.einsum("tkc,ock->to", h1_win, w2) + b2                     # (L2, 16)
    # Linear(6, 1) over the length axis
    return wl[0] @ h2 + bl[0]                                           # (16,)


def _fold_affine(w1, b1, w2, b2, wl, bl):
    """Extract W_eff (16, L_IN), b_eff (16, 1) of the affine network."""
    f = lambda xv: _single_forward(xv, w1, b1, w2, b2, wl, bl)
    b_eff = f(jnp.zeros((L_IN,), jnp.float32))                          # (16,)
    cols = jax.vmap(f)(jnp.eye(L_IN, dtype=jnp.float32))                # (L_IN, 16)
    w_eff = (cols - b_eff).T                                            # (16, L_IN)
    return w_eff, b_eff.reshape(C_HID, 1)


@jax.jit
def conv_model_forward(x, w1, b1, w2, b2, wl, bl):
    """x: (B, 10) float32. Returns (mu, std), each (B, 1) float32."""
    B, L = x.shape
    assert L - 4 == 6, "Linear(6,1) in the module requires input length 10"

    w_eff, b_eff = _fold_affine(
        w1.astype(jnp.float32), b1.astype(jnp.float32),
        w2.astype(jnp.float32), b2.astype(jnp.float32),
        wl.astype(jnp.float32), bl.astype(jnp.float32))

    # Batch tile: lane-dense, multiple of 256 for the v6e/v7x MXU.
    BT = min(1024, _round_up(B, 256))
    B_pad = _round_up(B, BT)
    xT = jnp.pad(x.T.astype(jnp.float32), ((0, 0), (0, B_pad - B)))     # (L, B_pad)

    out = pl.pallas_call(
        conv_model_kernel,
        out_shape=jax.ShapeDtypeStruct((2, B_pad), jnp.float32),
        grid=(B_pad // BT,),
        in_specs=[
            pl.BlockSpec((L, BT), lambda i: (0, i)),        # x tile (lane = batch)
            pl.BlockSpec((C_HID, L), lambda i: (0, 0)),     # folded weight
            pl.BlockSpec((C_HID, 1), lambda i: (0, 0)),     # folded bias
        ],
        out_specs=pl.BlockSpec((2, BT), lambda i: (0, i)),  # [mu; std] slab
        compiler_params=pltpu.CompilerParams(
            dimension_semantics=("parallel",)),
    )(xT, w_eff, b_eff)

    mu = out[0, :B].reshape(B, 1)
    std = out[1, :B].reshape(B, 1)
    return mu, std


def reference_forward(x, w1, b1, w2, b2, wl, bl):
    """Pure-JAX replica of the torch forward (for correctness check)."""
    y = jax.vmap(lambda xv: _single_forward(xv, w1, b1, w2, b2, wl, bl))(x)  # (B, 16)
    mu = jnp.mean(y, axis=1, keepdims=True)
    std = jnp.sqrt(jnp.sum((y - mu) ** 2, axis=1, keepdims=True) / (y.shape[1] - 1))
    return mu, std


def init_params(key):
    """Deterministic parameter init matching the torch layer shapes."""
    k1, k2, k3, k4, k5, k6 = jax.random.split(key, 6)
    a1 = 1.0 / jnp.sqrt(1.0 * KSIZE)
    a2 = 1.0 / jnp.sqrt(float(C_HID * KSIZE))
    a3 = 1.0 / jnp.sqrt(6.0)
    w1 = jax.random.uniform(k1, (C_HID, 1, KSIZE), jnp.float32, -a1, a1)
    b1 = jax.random.uniform(k2, (C_HID,), jnp.float32, -a1, a1)
    w2 = jax.random.uniform(k3, (C_HID, C_HID, KSIZE), jnp.float32, -a2, a2)
    b2 = jax.random.uniform(k4, (C_HID,), jnp.float32, -a2, a2)
    wl = jax.random.uniform(k5, (1, 6), jnp.float32, -a3, a3)
    bl = jax.random.uniform(k6, (1,), jnp.float32, -a3, a3)
    return w1, b1, w2, b2, wl, bl


if __name__ == "__main__":
    key = jax.random.PRNGKey(0)
    key_x, key_p = jax.random.split(key)

    B = 2
    x = jax.random.normal(key_x, (B, L_IN), jnp.float32)
    params = init_params(key_p)

    mu, std = conv_model_forward(x, *params)
    jax.block_until_ready((mu, std))

    mu_ref, std_ref = reference_forward(x, *params)
    assert mu.shape == (B, 1) and std.shape == (B, 1)
    assert jnp.allclose(mu, mu_ref, rtol=1e-4, atol=1e-5)
    assert jnp.allclose(std, std_ref, rtol=1e-4, atol=1e-5)

    # TODO(synk): explain_mode branch just returns mu.unsqueeze(-1); only the
    # default (mu, std) path is exercised here.
    print("KERNEL_OK")
</pallas_src>

<mosaic_0001>
module attributes {stable_mosaic.version = 11 : i64} {
  func.func @conv_model_kernel(%arg0: i32, %arg1: memref<10x256xf32, #tpu.memory_space<vmem>>, %arg2: memref<16x10xf32, #tpu.memory_space<vmem>>, %arg3: memref<16x1xf32, #tpu.memory_space<vmem>>, %arg4: memref<2x256xf32, #tpu.memory_space<vmem>>) attributes {dimension_semantics = [#tpu.dimension_semantics<parallel>], iteration_bounds = array<i64: 1>, scalar_prefetch = 0 : i64, scratch_operands = 0 : i64, tpu.core_type = #tpu.core_type<tc>, window_params = [{transform_indices = @transform_0, window_bounds = array<i64: 10, 256>}, {pipeline_mode = #tpu.pipeline_mode<synchronous>, transform_indices = @transform_1, window_bounds = array<i64: 16, 10>}, {pipeline_mode = #tpu.pipeline_mode<synchronous>, transform_indices = @transform_2, window_bounds = array<i64: 16, 1>}, {transform_indices = @transform_3, window_bounds = array<i64: 2, 256>}]} {
    %c0 = arith.constant 0 : index
    %c0_0 = arith.constant 0 : index
    %0 = vector.load %arg2[%c0, %c0_0] : memref<16x10xf32, #tpu.memory_space<vmem>>, vector<16x10xf32>
    %c0_1 = arith.constant 0 : index
    %c0_2 = arith.constant 0 : index
    %1 = vector.load %arg1[%c0_1, %c0_2] : memref<10x256xf32, #tpu.memory_space<vmem>>, vector<10x256xf32>
    %cst = arith.constant dense<0.000000e+00> : vector<16x256xf32>
    %2 = tpu.matmul %0, %1, %cst {dimension_numbers = #tpu.dot_dimension_numbers<[1], [0], [0], [1], [0, 0, 1, 1], [], []>} : vector<16x10xf32>, vector<10x256xf32>, vector<16x256xf32> -> vector<16x256xf32>
    %c0_3 = arith.constant 0 : index
    %c0_4 = arith.constant 0 : index
    %3 = vector.load %arg3[%c0_3, %c0_4] : memref<16x1xf32, #tpu.memory_space<vmem>>, vector<16x1xf32>
    %4 = vector.broadcast %3 : vector<16x1xf32> to vector<16x256xf32>
    %5 = arith.addf %2, %4 : vector<16x256xf32>
    %cst_5 = arith.constant dense<0.000000e+00> : vector<256xf32>
    %6 = vector.multi_reduction <add>, %5, %cst_5 [0] : vector<16x256xf32> to vector<256xf32>
    %7 = vector.shape_cast %6 : vector<256xf32> to vector<1x256xf32>
    %cst_6 = arith.constant 6.250000e-02 : f32
    %8 = vector.broadcast %cst_6 : f32 to vector<1x256xf32>
    %9 = arith.mulf %7, %8 : vector<1x256xf32>
    %10 = vector.broadcast %9 : vector<1x256xf32> to vector<16x256xf32>
    %11 = arith.subf %5, %10 : vector<16x256xf32>
    %12 = arith.mulf %11, %11 : vector<16x256xf32>
    %cst_7 = arith.constant dense<0.000000e+00> : vector<256xf32>
    %13 = vector.multi_reduction <add>, %12, %cst_7 [0] : vector<16x256xf32> to vector<256xf32>
    %14 = vector.shape_cast %13 : vector<256xf32> to vector<1x256xf32>
    %cst_8 = arith.constant 0.0666666701 : f32
    %15 = vector.broadcast %cst_8 : f32 to vector<1x256xf32>
    %16 = arith.mulf %14, %15 : vector<1x256xf32>
    %17 = math.sqrt %16 : vector<1x256xf32>
    %18 = tpu.concatenate %9, %17 in 0 : vector<1x256xf32>, vector<1x256xf32> -> vector<2x256xf32>
    %c0_9 = arith.constant 0 : index
    %c0_10 = arith.constant 0 : index
    %19 = vector.load %arg4[%c0_9, %c0_10] : memref<2x256xf32, #tpu.memory_space<vmem>>, vector<2x256xf32>
    tpu.vector_store %arg4[%c0_9, %c0_10], %18 {strides = array<i32>} : memref<2x256xf32, #tpu.memory_space<vmem>>, vector<2x256xf32>,
    return
  }
  func.func @transform_0(%arg0: i32) -> (i32, i32) {
    %c0_i32 = arith.constant 0 : i32
    %c0_i32_0 = arith.constant 0 : i32
    return %c0_i32, %arg0 : i32, i32
  }
  func.func @transform_1(%arg0: i32) -> (i32, i32) {
    %c0_i32 = arith.constant 0 : i32
    %c0_i32_0 = arith.constant 0 : i32
    %c0_i32_1 = arith.constant 0 : i32
    return %c0_i32, %c0_i32_0 : i32, i32
  }
  func.func @transform_2(%arg0: i32) -> (i32, i32) {
    %c0_i32 = arith.constant 0 : i32
    %c0_i32_0 = arith.constant 0 : i32
    %c0_i32_1 = arith.constant 0 : i32
    return %c0_i32, %c0_i32_0 : i32, i32
  }
  func.func @transform_3(%arg0: i32) -> (i32, i32) {
    %c0_i32 = arith.constant 0 : i32
    %c0_i32_0 = arith.constant 0 : i32
    return %c0_i32, %arg0 : i32, i32
  }
}

</mosaic_0001>

<bundles_post_ra>
// kernel: conv_model_forward.1
= control target key start
LH: loop header
LB: loop body
LE: loop exit
PB: predicated region body
PF: predicated region fallthrough
CT: control target
= control target key end

     0   :  { %vm39_vm0 = vcmask 1041408   ;;  %vm217_vm1 = vmmov 1   ;;  %v218_v2 = vmov 0.0   ;;  %v219_v6 = vmov 0   ;;  %s267_s0 = inlined_call_operand.vmem [shape: f32[10,256], index: 0, kind: input, shape index: {}]   ;;  %s268_s2 = inlined_call_operand.vmem [shape: f32[16,1], index: 2, kind: input, shape index: {}]   ;;  %s269_s1 = inlined_call_operand.vmem [shape: f32[16,10], index: 1, kind: input, shape index: {}]   ;;  %s270_s3 = inlined_call_operand.vmem [shape: f32[2,256], index: 3, kind: output, shape index: {}]  }
   0x1   :  { %v17_v0 = vld [vmem:[%s267_s0 + $0x8] sm:$0xff]  ;;  %v19_v1 = vld [vmem:[%s267_s0 + $0x18] sm:$0x3]  ;;  %vm202_vm2 = vmpackc.low %vm39_vm0, %vm217_vm1  ;;  %110 = vmatprep.mubr.f32.mxu0 %v218_v2  ;;  %116 = vmatprep.mubr.f32.mxu1 %v218_v2  ;;  %vm32_vm3 = vcmask 80896   ;;  %vm177_vm5 = vcmask 1040384  }
   0x2   :  { %v201_v3 = vpack.c.bf16 %v19_v1, %v17_v0  ;;  %v16_v4 = vld [vmem:[%s267_s0] sm:$0xff]  ;;  %v18_v5 = vld [vmem:[%s267_s0 + $0x10] sm:$0x3]  ;;  %212 = vset.pattern.permute.xlu0 %v219_v6  ;;  %v15_v10 = vld [vmem:[%s269_s1 + $0x8] sm:$0xff] }
   0x3   :  { %v204_v7 = vpack.c.bf16 %v18_v5, %v16_v4  ;;  %v20_v8 = vld [vmem:[%s268_s2] sm:$0xff]  ;;  %v21_v11 = vld [vmem:[%s268_s2 + $0x8] sm:$0xff] }
   0x4   :  { %203 = vmatprep.subr.msk.bf16.mxu0 %vm202_vm2, %v201_v3  ;;  %207 = vmatprep.subr.msk.bf16.mxu1 %vm202_vm2, %v201_v3  ;;  %v14_v9 = vld [vmem:[%s269_s1] sm:$0xff] }
   0x5   :  { %206 = vmatpush1.bf16.msk.msra.mxu0 %vm202_vm2, %v204_v7  ;;  %208 = vmatpush1.bf16.msk.msra.mxu1 %vm202_vm2, %v204_v7 }
   0x6   :  { %24 = vperm.xlu0 %212, %v20_v8  }
   0x8   :  { %198 = vmatmul.mubr.msk.f32.vlgmr.msra.gmra.mrb[0].mxu0 %vm32_vm3, %v14_v9  ;;  %199 = vmatmul.mubr.msk.f32.vlgmr.msra.gmra.mrb[0].mxu1 %vm32_vm3, %v15_v10 }
   0xa   :  { %29 = vperm.xlu0 %212, %v21_v11  }
  0x85   :  { %v25_v12 = vpop.permute.xlu0 %24 }
  0x89   :  { %v30_v13 = vpop.permute.xlu0 %29 }
  0xdb   :  { %v112_v14 = vpop.f32.mrb[0].mxu0  ;;  %v118_v15 = vpop.f32.mrb[0].mxu1 }
  0xdc   :  { %v113_v16 = vadd.f32 %v112_v14, %v25_v12  ;;  %v119_v17 = vadd.f32 %v118_v15, %v30_v13  ;;  %v114_v18 = vpop.f32.mrb[1].mxu0  ;;  %v120_v19 = vpop.f32.mrb[1].mxu1 }
  0xdd   :  { %v115_v20 = vadd.f32 %v114_v18, %v25_v12  ;;  %v121_v21 = vadd.f32 %v120_v19, %v30_v13 }
  0xde   :  { %v123_v22 = vadd.f32 %v119_v17, %v113_v16 }
  0xdf   :  { %v130_v23 = vadd.f32 %v121_v21, %v115_v20 }
  0xe0   :  { %v124_v24 = vrot.slane %v123_v22, 4 }
  0xe1   :  { %v131_v25 = vrot.slane %v130_v23, 4 }
  0xe2   :  { %v125_v26 = vadd.f32 %v124_v24, %v123_v22 }
  0xe3   :  { %v132_v27 = vadd.f32 %v131_v25, %v130_v23 }
  0xe4   :  { %v126_v28 = vrot.slane %v125_v26, 2 }
  0xe5   :  { %v133_v29 = vrot.slane %v132_v27, 2 }
  0xe6   :  { %v127_v30 = vadd.f32 %v126_v28, %v125_v26 }
  0xe7   :  { %v134_v31 = vadd.f32 %v133_v29, %v132_v27 }
  0xe8   :  { %v128_v32 = vrot.slane %v127_v30, 1 }
  0xe9   :  { %v135_v33 = vrot.slane %v134_v31, 1 }
  0xea   :  { %v129_v34 = vadd.f32 %v128_v32, %v127_v30 }
  0xeb   :  { %v136_v35 = vadd.f32 %v135_v33, %v134_v31 }
  0xec   :  { %v137_v36 = vmul.f32 0.0625, %v129_v34 }
  0xed   :  { %v138_v37 = vmul.f32 0.0625, %v136_v35 }
  0xee   :  { %v139_v38 = vsub.f32 %v113_v16, %v137_v36  ;;  %v141_v39 = vsub.f32 %v119_v17, %v137_v36 }
  0xef   :  { %v140_v40 = vsub.f32 %v115_v20, %v138_v37  ;;  %v142_v41 = vsub.f32 %v121_v21, %v138_v37 }
  0xf0   :  { %v143_v42 = vmul.f32 %v139_v38, %v139_v38  ;;  %v145_v43 = vmul.f32 %v141_v39, %v141_v39 }
  0xf1   :  { %v144_v44 = vmul.f32 %v140_v40, %v140_v40  ;;  %v146_v45 = vmul.f32 %v142_v41, %v142_v41 }
  0xf2   :  { %v147_v46 = vadd.f32 %v145_v43, %v143_v42 }
  0xf3   :  { %v154_v47 = vadd.f32 %v146_v45, %v144_v44 }
  0xf4   :  { %v148_v48 = vrot.slane %v147_v46, 4 }
  0xf5   :  { %v155_v49 = vrot.slane %v154_v47, 4 }
  0xf6   :  { %v149_v50 = vadd.f32 %v148_v48, %v147_v46 }
  0xf7   :  { %v156_v51 = vadd.f32 %v155_v49, %v154_v47 }
  0xf8   :  { %v150_v52 = vrot.slane %v149_v50, 2 }
  0xf9   :  { %v157_v53 = vrot.slane %v156_v51, 2 }
  0xfa   :  { %v151_v54 = vadd.f32 %v150_v52, %v149_v50 }
  0xfb   :  { %v158_v55 = vadd.f32 %v157_v53, %v156_v51 }
  0xfc   :  { %v152_v56 = vrot.slane %v151_v54, 1 }
  0xfd   :  { %v159_v57 = vrot.slane %v158_v55, 1 }
  0xfe   :  { %v153_v58 = vadd.f32 %v152_v56, %v151_v54 }
  0xff   :  { %v160_v59 = vadd.f32 %v159_v57, %v158_v55 }
 0x100   :  { %v161_v60 = vmul.f32 0.06666667, %v153_v58 }
 0x101   :  { %v162_v61 = vmul.f32 0.06666667, %v160_v59 }
 0x102   :  { %213 = vrsqrt.f32 %v161_v60  ;;  %vm165_vm4 = vcmp.eq.f32.partialorder %v161_v60, inf  ;;  %v168_v1 = vand.u32 2147483648, %v161_v60  ;;  %vm167_vm6 = vcmp.eq.f32.partialorder %v161_v60, 0.0 }
 0x103   :  { %215 = vrsqrt.f32 %v162_v61  ;;  %vm172_vm7 = vcmp.eq.f32.partialorder %v162_v61, inf  ;;  %v175_v4 = vand.u32 2147483648, %v162_v61  ;;  %vm174_vm8 = vcmp.eq.f32.partialorder %v162_v61, 0.0 }
 0x10c   :  { %v214_v62 = vpop.eup %213 }
 0x10d   :  { %v216_v63 = vpop.eup %215  ;;  %v164_v0 = vmul.f32 %v214_v62, %v161_v60 }
 0x10e   :  { %v171_v2 = vmul.f32 %v216_v63, %v162_v61 }
 0x10f   :  { %v166_v3 = vsel %vm165_vm4, %v161_v60, %v164_v0 }
 0x110   :  { %v169_v5 = vsel %vm167_vm6, %v168_v1, %v166_v3  ;;  %v173_v6 = vsel %vm172_vm7, %v162_v61, %v171_v2 }
 0x111   :  { %v178_v7 = vsel %vm177_vm5, %v137_v36, %v169_v5  ;;  %v176_v8 = vsel %vm174_vm8, %v175_v4, %v173_v6 }
 0x112   :  { %v179_v9 = vsel %vm177_vm5, %v138_v37, %v176_v8 }
 0x113   :  { %v182_v10 = vcombine.low %v178_v7, %v179_v9 }
 0x115   :  { %200 = vst.sshfl [vmem:[%s270_s3] sm:$0x33 pattern:$0x76325410] %v182_v10 }

</bundles_post_ra>
